<compile_context>
chip_gen: v5e
topology: v5e:2x2
jax: 0.10.0
libtpu: 0.0.40
codegen_flags: <defaults>
</compile_context>

<pallas_src>
import math
import functools

import jax
import jax.numpy as jnp
from jax.experimental import pallas as pl
from jax.experimental.pallas import tpu as pltpu


def _round_up(a: int, b: int) -> int:
    return -(-a // b) * b


_INV_SQRT2 = 1.0 / math.sqrt(2.0)


def _ffn_kernel(x_ref, w1t_ref, b1_ref, w2t_ref, b2_ref, o_ref, acc_ref):
    # x_ref:   [tm, Hp]        w1t_ref: [Hp, tmid]    b1_ref: [1, tmid]
    # w2t_ref: [tmid, Hp]      b2_ref:  [1, Hp]       o_ref:  [tm, Hp]
    # acc_ref: [tm, Hp] f32 accumulator (persists across the middle axis)
    j = pl.program_id(1)

    @pl.when(j == 0)
    def _():
        # Fold the output bias into the accumulator init.
        acc_ref[...] = jnp.broadcast_to(
            b2_ref[...].astype(jnp.float32), acc_ref.shape)

    x = x_ref[...]
    # fc1 slice on the MXU, f32 accumulation
    h = jnp.dot(x, w1t_ref[...], preferred_element_type=jnp.float32)
    h = h + b1_ref[...].astype(jnp.float32)
    # Exact (erf) GELU, matching torch.nn.GELU() default.
    # (erf goes to the EUP slot; the surrounding muls/adds ride the VPU)
    h = 0.5 * h * (1.0 + jax.lax.erf(h * _INV_SQRT2))
    # dropout: identity (eval mode)
    # fc2 slice on the MXU; h is cast back to the input/weight dtype
    # (documented precision choice — f32 inputs stay f32, bf16 inputs use the
    # bf16 MXU path)
    acc_ref[...] += jnp.dot(h.astype(x_ref.dtype), w2t_ref[...],
                            preferred_element_type=jnp.float32)

    @pl.when(j == pl.num_programs(1) - 1)
    def _():
        o_ref[...] = acc_ref[...].astype(o_ref.dtype)


def prepare_ffn_params(w1, b1, w2, b2, *, tmid=512, dtype=None):
    """Transpose + pad FFN params once (hoisted out of the per-call path).

    w1: [4H, H], b1: [4H], w2: [H, 4H], b2: [H].
    Pass dtype=jnp.bfloat16 to feed the MXU bf16 operands (f32 accumulation is
    kept inside the kernel).
    Returns (w1t [Hp, Mp], b1 [1, Mp], w2t [Mp, Hp], b2 [1, Hp]) with
    Hp = round_up(H, 128) and Mp a multiple of the middle tile.
    """
    middle, H = w1.shape
    if dtype is not None:
        w1, b1, w2, b2 = (a.astype(dtype) for a in (w1, b1, w2, b2))
    Hp = _round_up(H, 128)
    tmid_eff = min(tmid, _round_up(middle, 128))
    middle_p = _round_up(middle, tmid_eff)
    w1t = jnp.zeros((Hp, middle_p), w1.dtype).at[:H, :middle].set(w1.T)
    w2t = jnp.zeros((middle_p, Hp), w2.dtype).at[:middle, :H].set(w2.T)
    b1p = jnp.zeros((1, middle_p), b1.dtype).at[0, :middle].set(b1)
    b2p = jnp.zeros((1, Hp), b2.dtype).at[0, :H].set(b2)
    return w1t, b1p, w2t, b2p


@functools.partial(jax.jit, static_argnames=("tm", "tmid"))
def position_wise_ffn(x, w1t, b1, w2t, b2, *, tm=256, tmid=512):
    """x: [B, S, H]; (w1t, b1, w2t, b2) from prepare_ffn_params.

    tm:   row tile (multiple of 16); 256 suits v6e/v7x, try 128 on v5e.
    tmid: middle (4H) tile, multiple of 128. Must match prepare_ffn_params.
    """
    B, S, H = x.shape
    M = B * S
    Hp, middle_p = w1t.shape

    tm_eff = min(tm, _round_up(M, 16))          # small inputs: single row tile
    Mp = _round_up(M, tm_eff)
    tmid_eff = min(tmid, middle_p)
    assert middle_p % tmid_eff == 0, "middle padding must match tmid"

    x2 = x.reshape(M, H)
    x2 = jnp.pad(x2, ((0, Mp - M), (0, Hp - H)))  # zero pad: exact w.r.t. math

    grid = (Mp // tm_eff, middle_p // tmid_eff)

    itemsize = jnp.dtype(x.dtype).itemsize
    cost = pl.CostEstimate(
        flops=4 * Mp * Hp * middle_p,                 # two matmuls
        transcendentals=Mp * middle_p,                # erf per middle element
        bytes_accessed=(Mp * Hp * 2 * itemsize        # x in, y out
                        + 2 * Hp * middle_p * itemsize  # W1^T, W2^T
                        + (middle_p + Hp) * itemsize),  # biases
    )

    out = pl.pallas_call(
        _ffn_kernel,
        out_shape=jax.ShapeDtypeStruct((Mp, Hp), x.dtype),
        grid_spec=pltpu.PrefetchScalarGridSpec(
            num_scalar_prefetch=0,
            grid=grid,
            in_specs=[
                pl.BlockSpec((tm_eff, Hp), lambda i, j: (i, 0)),        # x rows
                pl.BlockSpec((Hp, tmid_eff), lambda i, j: (0, j)),      # W1^T slice
                pl.BlockSpec((1, tmid_eff), lambda i, j: (0, j)),       # b1 slice
                pl.BlockSpec((tmid_eff, Hp), lambda i, j: (j, 0)),      # W2^T slice
                pl.BlockSpec((1, Hp), lambda i, j: (0, 0)),             # b2
            ],
            out_specs=pl.BlockSpec((tm_eff, Hp), lambda i, j: (i, 0)),  # accum output
            scratch_shapes=[pltpu.VMEM((tm_eff, Hp), jnp.float32)],
        ),
        compiler_params=pltpu.CompilerParams(
            dimension_semantics=("parallel", "arbitrary"),
            vmem_limit_bytes=64 * 1024 * 1024,
        ),
        cost_estimate=cost,
    )(x2, w1t, b1, w2t, b2)

    return out[:M, :H].reshape(B, S, H)


def _reference(x, w1, b1, w2, b2):
    h = jnp.einsum("bsh,mh->bsm", x, w1) + b1
    h = 0.5 * h * (1.0 + jax.lax.erf(h / jnp.sqrt(2.0)))
    return jnp.einsum("bsm,hm->bsh", h, w2) + b2


if __name__ == "__main__":
    B, S, H = 2, 8, 32
    middle = 4 * H

    key = jax.random.PRNGKey(0)
    kx, k1, kb1, k2, kb2 = jax.random.split(key, 5)

    x = jax.random.normal(kx, (B, S, H), dtype=jnp.float32)

    # Deterministic init mimicking nn.Linear's uniform(-1/sqrt(fan_in), ...)
    lim1 = 1.0 / math.sqrt(H)
    w1 = jax.random.uniform(k1, (middle, H), jnp.float32, -lim1, lim1)
    b1 = jax.random.uniform(kb1, (middle,), jnp.float32, -lim1, lim1)
    lim2 = 1.0 / math.sqrt(middle)
    w2 = jax.random.uniform(k2, (H, middle), jnp.float32, -lim2, lim2)
    b2 = jax.random.uniform(kb2, (H,), jnp.float32, -lim2, lim2)

    # One-time parameter prep (transpose + lane-dense padding), hoisted out of
    # the per-call path.
    params = prepare_ffn_params(w1, b1, w2, b2)

    out = position_wise_ffn(x, *params)
    out = jax.block_until_ready(out)

    ref = _reference(x, w1, b1, w2, b2)
    assert out.shape == (B, S, H)
    assert jnp.allclose(out, ref, atol=1e-5, rtol=1e-5), "mismatch vs reference"

    print("KERNEL_OK")
</pallas_src>

<mosaic_0001>
module attributes {stable_mosaic.version = 11 : i64} {
  func.func @_ffn_kernel(%arg0: i32, %arg1: i32, %arg2: memref<16x128xf32, #tpu.memory_space<vmem>>, %arg3: memref<128x128xf32, #tpu.memory_space<vmem>>, %arg4: memref<1x128xf32, #tpu.memory_space<vmem>>, %arg5: memref<128x128xf32, #tpu.memory_space<vmem>>, %arg6: memref<1x128xf32, #tpu.memory_space<vmem>>, %arg7: memref<16x128xf32, #tpu.memory_space<vmem>>, %arg8: memref<16x128xf32, #tpu.memory_space<vmem>>) attributes {dimension_semantics = [#tpu.dimension_semantics<parallel>, #tpu.dimension_semantics<arbitrary>], iteration_bounds = array<i64: 1, 1>, scalar_prefetch = 0 : i64, scratch_operands = 1 : i64, tpu.core_type = #tpu.core_type<tc>, window_params = [{transform_indices = @transform_0, window_bounds = array<i64: 16, 128>}, {transform_indices = @transform_1, window_bounds = array<i64: 128, 128>}, {transform_indices = @transform_2, window_bounds = array<i64: 1, 128>}, {transform_indices = @transform_3, window_bounds = array<i64: 128, 128>}, {pipeline_mode = #tpu.pipeline_mode<synchronous>, transform_indices = @transform_4, window_bounds = array<i64: 1, 128>}, {transform_indices = @transform_5, window_bounds = array<i64: 16, 128>}]} {
    %c0_i32 = arith.constant 0 : i32
    %0 = arith.cmpi eq, %arg1, %c0_i32 : i32
    %1 = arith.extui %0 : i1 to i32
    %c0_i32_0 = arith.constant 0 : i32
    %2 = arith.cmpi ne, %1, %c0_i32_0 : i32
    scf.if %2 {
      %c0_18 = arith.constant 0 : index
      %c0_19 = arith.constant 0 : index
      %25 = vector.load %arg6[%c0_18, %c0_19] : memref<1x128xf32, #tpu.memory_space<vmem>>, vector<1x128xf32>
      %26 = vector.shape_cast %25 : vector<1x128xf32> to vector<1x128xf32>
      %27 = vector.broadcast %26 : vector<1x128xf32> to vector<16x128xf32>
      %c0_20 = arith.constant 0 : index
      %c0_21 = arith.constant 0 : index
      %28 = vector.load %arg8[%c0_20, %c0_21] : memref<16x128xf32, #tpu.memory_space<vmem>>, vector<16x128xf32>
      tpu.vector_store %arg8[%c0_20, %c0_21], %27 {strides = array<i32>} : memref<16x128xf32, #tpu.memory_space<vmem>>, vector<16x128xf32>,
    } else {
    }
    %c0 = arith.constant 0 : index
    %c0_1 = arith.constant 0 : index
    %3 = vector.load %arg2[%c0, %c0_1] : memref<16x128xf32, #tpu.memory_space<vmem>>, vector<16x128xf32>
    %c0_2 = arith.constant 0 : index
    %c0_3 = arith.constant 0 : index
    %4 = vector.load %arg3[%c0_2, %c0_3] : memref<128x128xf32, #tpu.memory_space<vmem>>, vector<128x128xf32>
    %cst = arith.constant dense<0.000000e+00> : vector<16x128xf32>
    %5 = tpu.matmul %3, %4, %cst {dimension_numbers = #tpu.dot_dimension_numbers<[1], [0], [0], [1], [0, 0, 1, 1], [], []>} : vector<16x128xf32>, vector<128x128xf32>, vector<16x128xf32> -> vector<16x128xf32>
    %c0_4 = arith.constant 0 : index
    %c0_5 = arith.constant 0 : index
    %6 = vector.load %arg4[%c0_4, %c0_5] : memref<1x128xf32, #tpu.memory_space<vmem>>, vector<1x128xf32>
    %7 = vector.broadcast %6 : vector<1x128xf32> to vector<16x128xf32>
    %8 = arith.addf %5, %7 : vector<16x128xf32>
    %cst_6 = arith.constant 5.000000e-01 : f32
    %9 = vector.broadcast %cst_6 : f32 to vector<16x128xf32>
    %10 = arith.mulf %9, %8 : vector<16x128xf32>
    %cst_7 = arith.constant 0.707106769 : f32
    %11 = vector.broadcast %cst_7 : f32 to vector<16x128xf32>
    %12 = arith.mulf %8, %11 : vector<16x128xf32>
    %13 = math.erf %12 : vector<16x128xf32>
    %cst_8 = arith.constant 1.000000e+00 : f32
    %14 = vector.broadcast %cst_8 : f32 to vector<16x128xf32>
    %15 = arith.addf %14, %13 : vector<16x128xf32>
    %16 = arith.mulf %10, %15 : vector<16x128xf32>
    %c0_9 = arith.constant 0 : index
    %c0_10 = arith.constant 0 : index
    %17 = vector.load %arg8[%c0_9, %c0_10] : memref<16x128xf32, #tpu.memory_space<vmem>>, vector<16x128xf32>
    %c0_11 = arith.constant 0 : index
    %c0_12 = arith.constant 0 : index
    %18 = vector.load %arg5[%c0_11, %c0_12] : memref<128x128xf32, #tpu.memory_space<vmem>>, vector<128x128xf32>
    %cst_13 = arith.constant dense<0.000000e+00> : vector<16x128xf32>
    %19 = tpu.matmul %16, %18, %cst_13 {dimension_numbers = #tpu.dot_dimension_numbers<[1], [0], [0], [1], [0, 0, 1, 1], [], []>} : vector<16x128xf32>, vector<128x128xf32>, vector<16x128xf32> -> vector<16x128xf32>
    %20 = arith.addf %17, %19 : vector<16x128xf32>
    %c0_14 = arith.constant 0 : index
    %c0_15 = arith.constant 0 : index
    %21 = vector.load %arg8[%c0_14, %c0_15] : memref<16x128xf32, #tpu.memory_space<vmem>>, vector<16x128xf32>
    tpu.vector_store %arg8[%c0_14, %c0_15], %20 {strides = array<i32>} : memref<16x128xf32, #tpu.memory_space<vmem>>, vector<16x128xf32>,
    %c0_i32_16 = arith.constant 0 : i32
    %22 = arith.cmpi eq, %arg1, %c0_i32_16 : i32
    %23 = arith.extui %22 : i1 to i32
    %c0_i32_17 = arith.constant 0 : i32
    %24 = arith.cmpi ne, %23, %c0_i32_17 : i32
    scf.if %24 {
      %c0_18 = arith.constant 0 : index
      %c0_19 = arith.constant 0 : index
      %25 = vector.load %arg8[%c0_18, %c0_19] : memref<16x128xf32, #tpu.memory_space<vmem>>, vector<16x128xf32>
      %c0_20 = arith.constant 0 : index
      %c0_21 = arith.constant 0 : index
      %26 = vector.load %arg7[%c0_20, %c0_21] : memref<16x128xf32, #tpu.memory_space<vmem>>, vector<16x128xf32>
      tpu.vector_store %arg7[%c0_20, %c0_21], %25 {strides = array<i32>} : memref<16x128xf32, #tpu.memory_space<vmem>>, vector<16x128xf32>,
    } else {
    }
    return
  }
  func.func @transform_0(%arg0: i32, %arg1: i32) -> (i32, i32) {
    %c0_i32 = arith.constant 0 : i32
    %c0_i32_0 = arith.constant 0 : i32
    return %arg0, %c0_i32 : i32, i32
  }
  func.func @transform_1(%arg0: i32, %arg1: i32) -> (i32, i32) {
    %c0_i32 = arith.constant 0 : i32
    %c0_i32_0 = arith.constant 0 : i32
    return %c0_i32, %arg1 : i32, i32
  }
  func.func @transform_2(%arg0: i32, %arg1: i32) -> (i32, i32) {
    %c0_i32 = arith.constant 0 : i32
    %c0_i32_0 = arith.constant 0 : i32
    return %c0_i32, %arg1 : i32, i32
  }
  func.func @transform_3(%arg0: i32, %arg1: i32) -> (i32, i32) {
    %c0_i32 = arith.constant 0 : i32
    %c0_i32_0 = arith.constant 0 : i32
    return %arg1, %c0_i32 : i32, i32
  }
  func.func @transform_4(%arg0: i32, %arg1: i32) -> (i32, i32) {
    %c0_i32 = arith.constant 0 : i32
    %c0_i32_0 = arith.constant 0 : i32
    %c0_i32_1 = arith.constant 0 : i32
    return %c0_i32, %c0_i32_0 : i32, i32
  }
  func.func @transform_5(%arg0: i32, %arg1: i32) -> (i32, i32) {
    %c0_i32 = arith.constant 0 : i32
    %c0_i32_0 = arith.constant 0 : i32
    return %arg0, %c0_i32 : i32, i32
  }
}

</mosaic_0001>

<bundles_post_ra>
// kernel: position_wise_ffn.1
= control target key start
LH: loop header
LB: loop body
LE: loop exit
PB: predicated region body
PF: predicated region fallthrough
CT: control target
= control target key end

     0   :  { %10 = vsyncpa [#allocation4], 0  ;;  %s437_s0 = inlined_call_operand.vmem [shape: f32[16,128], index: 0, kind: input, shape index: {}]   ;;  %s438_s1 = inlined_call_operand.hbm [shape: f32[128,128], index: 1, kind: input, shape index: {}]   ;;  %s439_s2 = inlined_call_operand.vmem [shape: f32[1,128], index: 2, kind: input, shape index: {}]   ;;  %s440_s3 = inlined_call_operand.hbm [shape: f32[128,128], index: 3, kind: input, shape index: {}]   ;;  %s441_s4 = inlined_call_operand.vmem [shape: f32[1,128], index: 4, kind: input, shape index: {}]   ;;  %s442_s5 = inlined_call_operand.vmem [shape: f32[16,128], index: 5, kind: output, shape index: {}]  }
   0x1   :  { %s18_s20 = sshll.u32 %s438_s1, 4  ;;  %s19_s20 = int_to_ptr.hbm [resolvable:$true] %s18_s20 }
   0x2   :  { %11 = vsyncpa [#allocation6], 0  ;;  %s349_s21 = smov [#allocation3]   ;;  %s33_s25 = sshll.u32 %s440_s3, 4  ;;  %s34_s25 = int_to_ptr.hbm [resolvable:$true] %s33_s25 }
   0x3   :  { %s20_s22 = sshll.u32 %s349_s21, 4  ;;  %s350_s26 = smov 128   ;;  %s21_s22 = int_to_ptr.vmem [resolvable:$true] %s20_s22 }
   0x4   :  { %s351_s27 = smov 8   ;;  %s352_s28 = smov [#allocation5]  }
   0x5   :  { %26 = dma.hbm_to_vmem [thread:$0]  %s19_s20, 2048, %s21_s22, [#allocation4], %s350_s26, %s350_s26, %s351_s27  }
   0x6   :  { %s35_s29 = sshll.u32 %s352_s28, 4  ;;  %s36_s29 = int_to_ptr.vmem [resolvable:$true] %s35_s29 }
   0x7   :  { %41 = dma.hbm_to_vmem [thread:$0]  %s34_s25, 2048, %s36_s29, [#allocation6], %s350_s26, %s350_s26, %s351_s27  }
   0x8   :  { %345 = dma.done.wait [#allocation4], 2048  }
   0x9   :  { %346 = vsyncadd [#allocation4], 4294965248 }
   0xa   :  { %347 = dma.done.wait [#allocation6], 2048  }
   0xb   :  { %348 = vsyncadd [#allocation6], 4294965248  ;;  %v79_v0 = vld [vmem:[#allocation3 + $0x78] sm:$0xff]  ;;  %v78_v1 = vld [vmem:[#allocation3 + $0x70] sm:$0xff] }
   0xc   :  { %84 = vmatpush.msra.mxu0 %v79_v0  ;;  %255 = vmatpush.msra.mxu2 %v79_v0  ;;  %v77_v2 = vld [vmem:[#allocation3 + $0x68] sm:$0xff]  ;;  %v76_v3 = vld [vmem:[#allocation3 + $0x60] sm:$0xff]  ;;  %v75_v4 = vld [vmem:[#allocation3 + $0x58] sm:$0xff] }
   0xd   :  { %v74_v5 = vld [vmem:[#allocation3 + $0x50] sm:$0xff]  ;;  %v73_v6 = vld [vmem:[#allocation3 + $0x48] sm:$0xff]  ;;  %v72_v7 = vld [vmem:[#allocation3 + $0x40] sm:$0xff] }
   0xe   :  { %85 = vmatpush.msra.mxu0 %v78_v1  ;;  %256 = vmatpush.msra.mxu2 %v78_v1  ;;  %v71_v8 = vld [vmem:[#allocation3 + $0x38] sm:$0xff]  ;;  %v70_v9 = vld [vmem:[#allocation3 + $0x30] sm:$0xff]  ;;  %v69_v10 = vld [vmem:[#allocation3 + $0x28] sm:$0xff] }
   0xf   :  { %v68_v11 = vld [vmem:[#allocation3 + $0x20] sm:$0xff]  ;;  %v67_v12 = vld [vmem:[#allocation3 + $0x18] sm:$0xff]  ;;  %v66_v13 = vld [vmem:[#allocation3 + $0x10] sm:$0xff] }
  0x10   :  { %86 = vmatpush.msra.mxu0 %v77_v2  ;;  %257 = vmatpush.msra.mxu2 %v77_v2  ;;  %v65_v14 = vld [vmem:[#allocation3 + $0x8] sm:$0xff]  ;;  %v64_v15 = vld [vmem:[#allocation3] sm:$0xff]  ;;  %v212_v18 = vld [vmem:[#allocation5 + $0x78] sm:$0xff] }
  0x11   :  { %v62_v16 = vld [vmem:[%s437_s0] sm:$0xff]  ;;  %v63_v17 = vld [vmem:[%s437_s0 + $0x8] sm:$0xff]  ;;  %213 = vmatpush.msra.mxu1 %v212_v18  ;;  %271 = vmatpush.msra.mxu3 %v212_v18  ;;  %v211_v19 = vld [vmem:[#allocation5 + $0x70] sm:$0xff] }
  0x12   :  { %87 = vmatpush.msra.mxu0 %v76_v3  ;;  %258 = vmatpush.msra.mxu2 %v76_v3  ;;  %v210_v20 = vld [vmem:[#allocation5 + $0x68] sm:$0xff]  ;;  %v209_v21 = vld [vmem:[#allocation5 + $0x60] sm:$0xff]  ;;  %v208_v23 = vld [vmem:[#allocation5 + $0x58] sm:$0xff] }
  0x13   :  { %214 = vmatpush.msra.mxu1 %v211_v19  ;;  %272 = vmatpush.msra.mxu3 %v211_v19  ;;  %v291_v22 = vld [vmem:[%s439_s2] ss:$0 sm:$0xff]  ;;  %v207_v25 = vld [vmem:[#allocation5 + $0x50] sm:$0xff]  ;;  %v206_v27 = vld [vmem:[#allocation5 + $0x48] sm:$0xff] }
  0x14   :  { %88 = vmatpush.msra.mxu0 %v75_v4  ;;  %259 = vmatpush.msra.mxu2 %v75_v4  ;;  %v205_v29 = vld [vmem:[#allocation5 + $0x40] sm:$0xff]  ;;  %v204_v30 = vld [vmem:[#allocation5 + $0x38] sm:$0xff]  ;;  %v203_v33 = vld [vmem:[#allocation5 + $0x30] sm:$0xff] }
  0x15   :  { %215 = vmatpush.msra.mxu1 %v210_v20  ;;  %273 = vmatpush.msra.mxu3 %v210_v20  ;;  %v202_v36 = vld [vmem:[#allocation5 + $0x28] sm:$0xff]  ;;  %v201_v39 = vld [vmem:[#allocation5 + $0x20] sm:$0xff]  ;;  %v200_v43 = vld [vmem:[#allocation5 + $0x18] sm:$0xff] }
  0x16   :  { %89 = vmatpush.msra.mxu0 %v74_v5  ;;  %260 = vmatpush.msra.mxu2 %v74_v5  ;;  %v199_v47 = vld [vmem:[#allocation5 + $0x10] sm:$0xff]  ;;  %v198_v52 = vld [vmem:[#allocation5 + $0x8] sm:$0xff]  ;;  %v197_v56 = vld [vmem:[#allocation5] sm:$0xff] }
  0x17   :  { %216 = vmatpush.msra.mxu1 %v209_v21  ;;  %274 = vmatpush.msra.mxu3 %v209_v21 }
  0x18   :  { %90 = vmatpush.msra.mxu0 %v73_v6  ;;  %261 = vmatpush.msra.mxu2 %v73_v6 }
  0x19   :  { %217 = vmatpush.msra.mxu1 %v208_v23  ;;  %275 = vmatpush.msra.mxu3 %v208_v23 }
  0x1a   :  { %91 = vmatpush.msra.mxu0 %v72_v7  ;;  %262 = vmatpush.msra.mxu2 %v72_v7 }
  0x1b   :  { %218 = vmatpush.msra.mxu1 %v207_v25  ;;  %276 = vmatpush.msra.mxu3 %v207_v25 }
  0x1c   :  { %92 = vmatpush.msra.mxu0 %v71_v8  ;;  %263 = vmatpush.msra.mxu2 %v71_v8 }
  0x1d   :  { %219 = vmatpush.msra.mxu1 %v206_v27  ;;  %277 = vmatpush.msra.mxu3 %v206_v27 }
  0x1e   :  { %93 = vmatpush.msra.mxu0 %v70_v9  ;;  %264 = vmatpush.msra.mxu2 %v70_v9 }
  0x1f   :  { %220 = vmatpush.msra.mxu1 %v205_v29  ;;  %278 = vmatpush.msra.mxu3 %v205_v29 }
  0x20   :  { %94 = vmatpush.msra.mxu0 %v69_v10  ;;  %265 = vmatpush.msra.mxu2 %v69_v10 }
  0x21   :  { %221 = vmatpush.msra.mxu1 %v204_v30  ;;  %279 = vmatpush.msra.mxu3 %v204_v30 }
  0x22   :  { %95 = vmatpush.msra.mxu0 %v68_v11  ;;  %266 = vmatpush.msra.mxu2 %v68_v11 }
  0x23   :  { %222 = vmatpush.msra.mxu1 %v203_v33  ;;  %280 = vmatpush.msra.mxu3 %v203_v33 }
  0x24   :  { %96 = vmatpush.msra.mxu0 %v67_v12  ;;  %267 = vmatpush.msra.mxu2 %v67_v12 }
  0x25   :  { %223 = vmatpush.msra.mxu1 %v202_v36  ;;  %281 = vmatpush.msra.mxu3 %v202_v36 }
  0x26   :  { %97 = vmatpush.msra.mxu0 %v66_v13  ;;  %268 = vmatpush.msra.mxu2 %v66_v13 }
  0x27   :  { %224 = vmatpush.msra.mxu1 %v201_v39  ;;  %282 = vmatpush.msra.mxu3 %v201_v39 }
  0x28   :  { %98 = vmatpush.msra.mxu0 %v65_v14  ;;  %269 = vmatpush.msra.mxu2 %v65_v14 }
  0x29   :  { %225 = vmatpush.msra.mxu1 %v200_v43  ;;  %283 = vmatpush.msra.mxu3 %v200_v43 }
  0x2a   :  { %99 = vmatpush.msra.mxu0 %v64_v15  ;;  %270 = vmatpush.msra.mxu2 %v64_v15 }
  0x2b   :  { %100 = vmatmul.f32.vlgmr.msra.gmra.mxu0 %v62_v16  ;;  %103 = vmatmul.f32.vlgmr.msra.gmra.mxu2 %v63_v17 }
  0x2c   :  { %226 = vmatpush.msra.mxu1 %v199_v47  ;;  %284 = vmatpush.msra.mxu3 %v199_v47 }
  0x2e   :  { %227 = vmatpush.msra.mxu1 %v198_v52  ;;  %285 = vmatpush.msra.mxu3 %v198_v52 }
  0x30   :  { %228 = vmatpush.msra.mxu1 %v197_v56  ;;  %286 = vmatpush.msra.mxu3 %v197_v56  ;;  %v292_v56 = vld [vmem:[%s441_s4] ss:$0 sm:$0xff] }
  0xa8   :  { %v101_v24 = vpop.f32.mrf.mxu0 }
  0xa9   :  { %v398_v26 = vadd.f32 %v291_v22, %v101_v24 }
  0xab   :  { %v401_v28 = vmul.f32 0.70710677, %v398_v26  ;;  %v107_v47 = vmul.f32 0.5, %v398_v26 }
  0xad   :  { %v111_v31 = vmul.f32 %v401_v28, %v401_v28 }
  0xae   :  { %v104_v32 = vpop.f32.mrf.mxu2 }
  0xaf   :  { %v405_v34 = vmin.f32 %v111_v31, 16.0  ;;  %v407_v35 = vadd.f32 %v291_v22, %v104_v32 }
  0xb1   :  { %v113_v37 = vmul.f32 2.1237322e-06, %v405_v34  ;;  %v411_v38 = vmul.f32 0.70710677, %v407_v35  ;;  %v124_v40 = vmul.f32 3.8918573e-05, %v405_v34 }
  0xb3   :  { %v114_v41 = vadd.f32 0.00028619796, %v113_v37  ;;  %v151_v42 = vmul.f32 %v411_v38, %v411_v38  ;;  %v125_v44 = vadd.f32 0.001143296, %v124_v40 }
  0xb5   :  { %v115_v45 = vmul.f32 %v114_v41, %v405_v34  ;;  %v152_v46 = vmin.f32 %v151_v42, 16.0  ;;  %v126_v48 = vmul.f32 %v125_v44, %v405_v34 }
  0xb7   :  { %v153_v49 = vmul.f32 2.1237322e-06, %v152_v46  ;;  %v164_v50 = vmul.f32 3.8918573e-05, %v152_v46  ;;  %v116_v51 = vadd.f32 0.0036580483, %v115_v45 }
  0xb8   :  { %v127_v53 = vadd.f32 0.014752088, %v126_v48 }
  0xb9   :  { %v154_v54 = vadd.f32 0.00028619796, %v153_v49  ;;  %v165_v55 = vadd.f32 0.001143296, %v164_v50  ;;  %v117_v60 = vmul.f32 %v116_v51, %v405_v34 }
  0xba   :  { %v128_v57 = vmul.f32 %v127_v53, %v405_v34  ;;  %v108_v53 = vmul.f32 0.5, %v407_v35 }
  0xbb   :  { %v155_v58 = vmul.f32 %v154_v54, %v152_v46  ;;  %v166_v59 = vmul.f32 %v165_v55, %v152_v46  ;;  %v118_v2 = vadd.f32 0.05243302, %v117_v60 }
  0xbc   :  { %v129_v61 = vadd.f32 0.112945676, %v128_v57 }
  0xbd   :  { %v156_v62 = vadd.f32 0.0036580483, %v155_v58  ;;  %v167_v63 = vadd.f32 0.014752088, %v166_v59  ;;  %v119_v8 = vmul.f32 %v118_v2, %v405_v34 }
  0xbe   :  { %v130_v0 = vmul.f32 %v129_v61, %v405_v34 }
  0xbf   :  { %v168_v1 = vmul.f32 %v167_v63, %v152_v46  ;;  %v157_v4 = vmul.f32 %v156_v62, %v152_v46  ;;  %v120_v13 = vadd.f32 0.18741608, %v119_v8 }
  0xc0   :  { %v131_v3 = vadd.f32 0.4994258, %v130_v0 }
  0xc1   :  { %v169_v5 = vadd.f32 0.112945676, %v168_v1  ;;  %v158_v10 = vadd.f32 0.05243302, %v157_v4  ;;  %v121_v17 = vmul.f32 %v120_v13, %v405_v34 }
  0xc2   :  { %v132_v6 = vmul.f32 %v131_v3, %v405_v34 }
  0xc3   :  { %v170_v7 = vmul.f32 %v169_v5, %v152_v46  ;;  %v159_v14 = vmul.f32 %v158_v10, %v152_v46  ;;  %v122_v21 = vadd.f32 1.1283791, %v121_v17 }
  0xc4   :  { %v133_v9 = vadd.f32 1.0, %v132_v6 }
  0xc5   :  { %v171_v11 = vadd.f32 0.4994258, %v170_v7  ;;  %v160_v18 = vadd.f32 0.18741608, %v159_v14  ;;  %v123_v31 = vmul.f32 %v122_v21, %v401_v28 }
  0xc6   :  { %293 = vrcp.f32 %v133_v9  ;;  %v145_v22 = vand.u32 2147483648, %v133_v9  ;;  %v143_v27 = vand.u32 2147483647, %v133_v9  ;;  %vm139_vm1 = vweird.f32 %v133_v9 }
  0xc7   :  { %v172_v12 = vmul.f32 %v171_v11, %v152_v46  ;;  %v161_v24 = vmul.f32 %v160_v18, %v152_v46 }
  0xc8   :  { %v146_v32 = vor.u32 1.1754944e-38, %v145_v22  ;;  %vm144_vm3 = vcmp.eq.f32.partialorder %v143_v27, 8.507059e+37 }
  0xc9   :  { %v173_v15 = vadd.f32 1.0, %v172_v12  ;;  %v162_v36 = vadd.f32 1.1283791, %v161_v24 }
  0xcb   :  { %295 = vrcp.f32 %v173_v15  ;;  %v185_v37 = vand.u32 2147483648, %v173_v15  ;;  %v183_v41 = vand.u32 2147483647, %v173_v15  ;;  %vm179_vm5 = vweird.f32 %v173_v15 }
  0xcc   :  { %v294_v16 = vpop.eup %293  ;;  %v163_v46 = vmul.f32 %v162_v36, %v411_v38 }
  0xcd   :  { %v135_v19 = vmul.f32 %v294_v16, %v133_v9  ;;  %vm140_vm0 = vweird.f32 %v294_v16  ;;  %v186_v45 = vor.u32 1.1754944e-38, %v185_v37  ;;  %vm184_vm7 = vcmp.eq.f32.partialorder %v183_v41, 8.507059e+37 }
  0xce   :  { %vm141_vm2 = vmor %vm139_vm1, %vm140_vm0 }
  0xcf   :  { %v136_v20 = vsub.f32 1.0, %v135_v19 }
  0xd1   :  { %v296_v23 = vpop.eup %295  ;;  %v137_v25 = vmul.f32 %v294_v16, %v136_v20 }
  0xd2   :  { %v175_v29 = vmul.f32 %v296_v23, %v173_v15  ;;  %vm180_vm4 = vweird.f32 %v296_v23 }
  0xd3   :  { %v138_v30 = vadd.f32 %v294_v16, %v137_v25  ;;  %vm181_vm6 = vmor %vm179_vm5, %vm180_vm4 }
  0xd4   :  { %v176_v33 = vsub.f32 1.0, %v175_v29 }
  0xd5   :  { %v142_v34 = vsel %vm141_vm2, %v294_v16, %v138_v30 }
  0xd6   :  { %v147_v39 = vsel %vm144_vm3, %v146_v32, %v142_v34  ;;  %v177_v40 = vmul.f32 %v296_v23, %v176_v33 }
  0xd7   :  { %v148_v42 = vmul.f32 %v147_v39, %v123_v31 }
  0xd8   :  { %v178_v43 = vadd.f32 %v296_v23, %v177_v40 }
  0xd9   :  { %v253_v44 = vclamps-f32 %v148_v42, 1.0 }
  0xda   :  { %v182_v28 = vsel %vm181_vm6, %v296_v23, %v178_v43 }
  0xdb   :  { %v191_v48 = vadd.f32 1.0, %v253_v44  ;;  %v187_v49 = vsel %vm184_vm7, %v186_v45, %v182_v28 }
  0xdc   :  { %v188_v50 = vmul.f32 %v187_v49, %v163_v46 }
  0xdd   :  { %v193_v51 = vmul.f32 %v191_v48, %v107_v47 }
  0xde   :  { %v254_v52 = vclamps-f32 %v188_v50, 1.0 }
  0xdf   :  { %229 = vmatmul.f32.vlgmr.msra.gmra.mxu1 %v193_v51 }
  0xe0   :  { %v192_v54 = vadd.f32 1.0, %v254_v52 }
  0xe2   :  { %v194_v55 = vmul.f32 %v192_v54, %v108_v53 }
  0xe4   :  { %232 = vmatmul.f32.vlgmr.msra.gmra.mxu3 %v194_v55 }
 0x15c   :  { %v230_v38 = vpop.f32.mrf.mxu1 }
 0x15d   :  { %v236_v57 = vadd.f32 %v292_v56, %v230_v38 }
 0x15f   :  { %245 = vst [vmem:[%s442_s5] sm:$0xff] %v236_v57 }
 0x167   :  { %v233_v26 = vpop.f32.mrf.mxu3 }
 0x168   :  { %v237_v58 = vadd.f32 %v292_v56, %v233_v26 }
 0x16a   :  { %246 = vst [vmem:[%s442_s5 + $0x8] sm:$0xff] %v237_v58 }
 0x16b   :  { %251 = vsyncpa [#allocation4], 1 }
 0x16c   :  { %252 = vsyncpa [#allocation6], 1 }

</bundles_post_ra>
